<compile_context>
chip_gen: v5e
topology: v5e:2x2
jax: 0.10.0
libtpu: 0.0.40
codegen_flags: <defaults>
</compile_context>

<pallas_src>
import math

import jax
import jax.numpy as jnp
from jax.experimental import pallas as pl
from jax.experimental.pallas import tpu as pltpu


def _round_up(x: int, m: int) -> int:
    return ((x + m - 1) // m) * m


def _largest_divisor_at_most(n: int, cap: int) -> int:
    cap = max(1, min(n, cap))
    for c in range(cap, 0, -1):
        if n % c == 0:
            return c
    return 1


def _make_masked_kernel(num_heads, d_k, batch_tile, feat_dim, mm_dtype):
    scale = 1.0 / math.sqrt(d_k)
    D = feat_dim

    def kernel(q_ref, kpt_ref, md_ref, vmean_ref,
               wq_ref, bq_ref, wo_ref, bo_ref, o_ref):
        bt, lq_t, E = q_ref.shape
        # Single collapsed Q projection for all batch rows in this block
        # (fills the MXU much better than bt tiny matmuls).
        q_flat = q_ref[...].reshape(bt * lq_t, E)
        qp = jnp.dot(q_flat, wq_ref[...],
                     preferred_element_type=jnp.float32) + bq_ref[...]
        qp = qp.astype(mm_dtype)
        bo = bo_ref[...]
        wo_h = [wo_ref[h] for h in range(num_heads)]          # (D, nh_p) each

        for b in range(batch_tile):                           # small, unrolled
            qp_b = qp[b * lq_t:(b + 1) * lq_t, :]
            md_b = md_ref[b]                                  # (Lk, 2D)
            vmean_b = vmean_ref[b]                            # (1, D)

            acc = None
            for h in range(num_heads):
                qh = qp_b[:, h * d_k:(h + 1) * d_k]           # (lq_t, d_k)
                kh_t = kpt_ref[b, h]                          # (d_k, Lk)
                s = jnp.dot(qh, kh_t,
                            preferred_element_type=jnp.float32) * scale
                # Row-max over raw scores; if a masked key beats every unmasked
                # one by >~88 the unmasked exps underflow and the v_mean
                # fallback fires (reference would give the unmasked average).
                # Extremely unlikely at 1/sqrt(d_k) score scale.
                e = jnp.exp(s - jnp.max(s, axis=-1, keepdims=True))
                # Fused numerator/denominator:
                #   md = [mask*value | mask]  ->  nd = [e@(m*v) | e@m]
                nd = jnp.dot(e.astype(mm_dtype), md_b,
                             preferred_element_type=jnp.float32)
                num = nd[:, :D]
                den = nd[:, D:]
                ok = den > 0.0
                den_safe = jnp.where(ok, den, 1.0)
                inv = pl.reciprocal(den_safe, approx=True)
                inv = inv * (2.0 - den_safe * inv)            # one Newton step
                # PyTorch masked_fill(-1e9)+softmax degenerates to uniform
                # weights when a channel has every key masked -> mean over keys.
                xh = jnp.where(ok, num * inv, vmean_b)
                contrib = jnp.dot(xh.astype(mm_dtype), wo_h[h],
                                  preferred_element_type=jnp.float32)
                acc = contrib if acc is None else acc + contrib

            o_ref[b] = (acc + bo).astype(o_ref.dtype)

    return kernel


def _make_nomask_kernel(num_heads, d_k, batch_tile, nh_p, mm_dtype):
    scale = 1.0 / math.sqrt(d_k)

    def kernel(q_ref, kpt_ref, vwo_ref, wq_ref, bq_ref, bo_ref, o_ref):
        bt, lq_t, E = q_ref.shape
        q_flat = q_ref[...].reshape(bt * lq_t, E)
        qp = jnp.dot(q_flat, wq_ref[...],
                     preferred_element_type=jnp.float32) + bq_ref[...]
        qp = qp.astype(mm_dtype)
        bo = bo_ref[...]

        for b in range(batch_tile):
            qp_b = qp[b * lq_t:(b + 1) * lq_t, :]
            vwo_b = vwo_ref[b]                                # (Lk, H*nh_p)

            acc = None
            for h in range(num_heads):
                qh = qp_b[:, h * d_k:(h + 1) * d_k]
                kh_t = kpt_ref[b, h]
                s = jnp.dot(qh, kh_t,
                            preferred_element_type=jnp.float32) * scale
                e = jnp.exp(s - jnp.max(s, axis=-1, keepdims=True))
                den = jnp.sum(e, axis=-1, keepdims=True)      # >= 1
                inv = pl.reciprocal(den, approx=True)
                inv = inv * (2.0 - den * inv)
                # Algebraic fusion (valid without a mask):
                #   (softmax(s) @ v) @ Wo_h == inv * (e @ (v @ Wo_h))
                contrib = jnp.dot(e.astype(mm_dtype),
                                  vwo_b[:, h * nh_p:(h + 1) * nh_p],
                                  preferred_element_type=jnp.float32) * inv
                acc = contrib if acc is None else acc + contrib

            o_ref[b] = (acc + bo).astype(o_ref.dtype)

    return kernel


def multi_time_attention(query, key, value, params, num_heads, mask=None, *,
                         batch_block=8, q_block=256, use_bf16_matmul=False,
                         vmem_limit_bytes=None):
    """Pallas implementation of multiTimeAttention.forward (inference path)."""
    # TODO(synk): attention-weight dropout (training mode) is not implemented.
    wq, bq, wk, bk, wo, bo = params
    B, Lq, E = query.shape
    _, Lk, D = value.shape
    nhidden = wo.shape[1]
    assert E % num_heads == 0
    d_k = E // num_heads
    out_dtype = query.dtype
    f32 = jnp.float32
    mm_dtype = jnp.bfloat16 if use_bf16_matmul else f32

    # ------------------------- tile / grid selection -------------------------
    q_block = max(8, (q_block // 8) * 8)
    lq_t = min(q_block, _round_up(Lq, 8))            # multiple of 8
    Lq_p = _round_up(Lq, lq_t)
    n_q = Lq_p // lq_t
    bt = _largest_divisor_at_most(B, batch_block)
    # Keep >= 2 grid steps so both v7x TensorCores get work.
    while bt > 1 and (B // bt) * n_q < 2:
        bt = _largest_divisor_at_most(B, bt - 1)

    nh_p = _round_up(nhidden, 128)                   # lane-dense output / Wo
    pad_n = nh_p - nhidden

    # --------- qi-invariant precompute, hoisted to plain XLA (runs once) -----
    kp = jnp.dot(key.astype(f32), wk.astype(f32)) + bk.astype(f32)  # (B, Lk, E)
    kpt = kp.reshape(B, Lk, num_heads, d_k).transpose(0, 2, 3, 1)   # (B,H,dk,Lk)
    kpt = kpt.astype(mm_dtype)

    bo_p = jnp.pad(bo.astype(f32), ((0, 0), (0, pad_n))) if pad_n else bo.astype(f32)

    q_in = query.astype(mm_dtype)
    if Lq_p != Lq:
        q_in = jnp.pad(q_in, ((0, 0), (0, Lq_p - Lq), (0, 0)))

    has_mask = mask is not None
    if has_mask:
        m01 = (jnp.asarray(mask) != 0).astype(f32)                    # (B,Lk,D)
        md = jnp.concatenate([m01 * value.astype(f32), m01], axis=-1)  # (B,Lk,2D)
        md = md.astype(mm_dtype)
        v_mean = jnp.mean(value.astype(f32), axis=1, keepdims=True)    # (B,1,D)
        wo_p = jnp.pad(wo.astype(f32), ((0, 0), (0, pad_n))) if pad_n else wo.astype(f32)
        wo_p = wo_p.reshape(num_heads, D, nh_p).astype(mm_dtype)

        kernel = _make_masked_kernel(num_heads, d_k, bt, D, mm_dtype)
        data_inputs = [q_in, kpt, md, v_mean]
        data_specs = [
            pl.BlockSpec((bt, lq_t, E), lambda b, qi: (b, qi, 0)),
            pl.BlockSpec((bt, num_heads, d_k, Lk), lambda b, qi: (b, 0, 0, 0)),
            pl.BlockSpec((bt, Lk, 2 * D), lambda b, qi: (b, 0, 0)),
            pl.BlockSpec((bt, 1, D), lambda b, qi: (b, 0, 0)),
        ]
        weight_inputs = [wq.astype(mm_dtype), bq.astype(f32), wo_p, bo_p]
        weight_specs = [
            pl.BlockSpec((E, E), lambda b, qi: (0, 0)),
            pl.BlockSpec((1, E), lambda b, qi: (0, 0)),
            pl.BlockSpec((num_heads, D, nh_p), lambda b, qi: (0, 0, 0)),
            pl.BlockSpec((1, nh_p), lambda b, qi: (0, 0)),
        ]
    else:
        # Fold value straight into the output projection once per head.
        vwo = jnp.einsum('bkd,hdn->bkhn', value.astype(f32),
                         wo.astype(f32).reshape(num_heads, D, nhidden))
        if pad_n:
            vwo = jnp.pad(vwo, ((0, 0), (0, 0), (0, 0), (0, pad_n)))
        vwo = vwo.reshape(B, Lk, num_heads * nh_p).astype(mm_dtype)

        kernel = _make_nomask_kernel(num_heads, d_k, bt, nh_p, mm_dtype)
        data_inputs = [q_in, kpt, vwo]
        data_specs = [
            pl.BlockSpec((bt, lq_t, E), lambda b, qi: (b, qi, 0)),
            pl.BlockSpec((bt, num_heads, d_k, Lk), lambda b, qi: (b, 0, 0, 0)),
            pl.BlockSpec((bt, Lk, num_heads * nh_p), lambda b, qi: (b, 0, 0)),
        ]
        weight_inputs = [wq.astype(mm_dtype), bq.astype(f32), bo_p]
        weight_specs = [
            pl.BlockSpec((E, E), lambda b, qi: (0, 0)),
            pl.BlockSpec((1, E), lambda b, qi: (0, 0)),
            pl.BlockSpec((1, nh_p), lambda b, qi: (0, 0)),
        ]

    # -------- VMEM budgeting derived from block sizes (v7x-safe <= 64 MiB) ---
    if vmem_limit_bytes is None:
        blk = sum(math.prod(s.block_shape) * a.dtype.itemsize
                  for a, s in zip(data_inputs + weight_inputs,
                                  data_specs + weight_specs))
        out_blk = bt * lq_t * nh_p * jnp.dtype(out_dtype).itemsize
        temps = 4 * (bt * lq_t * E + 4 * lq_t * Lk + 2 * lq_t * nh_p
                     + lq_t * max(2 * D, 128))
        vmem_limit_bytes = int(min(max(2 * (blk + out_blk) + temps + (2 << 20),
                                       16 << 20), 64 << 20))

    grid_spec = pltpu.PrefetchScalarGridSpec(
        num_scalar_prefetch=0,
        grid=(B // bt, n_q),
        in_specs=data_specs + weight_specs,
        out_specs=pl.BlockSpec((bt, lq_t, nh_p), lambda b, qi: (b, qi, 0)),
    )

    out_p = pl.pallas_call(
        kernel,
        out_shape=jax.ShapeDtypeStruct((B, Lq_p, nh_p), out_dtype),
        grid_spec=grid_spec,
        compiler_params=pltpu.CompilerParams(
            dimension_semantics=("parallel", "parallel"),
            vmem_limit_bytes=vmem_limit_bytes),
    )(*data_inputs, *weight_inputs)

    if Lq_p != Lq or nh_p != nhidden:
        out_p = out_p[:, :Lq, :nhidden]
    return out_p


def reference_forward(query, key, value, params, num_heads, mask=None):
    """Pure-JAX replica of the PyTorch forward for verification."""
    wq, bq, wk, bk, wo, bo = params
    B, Lq, E = query.shape
    _, Lk, D = value.shape
    d_k = E // num_heads

    qp = (query @ wq + bq).reshape(B, Lq, num_heads, d_k).transpose(0, 2, 1, 3)
    kp = (key @ wk + bk).reshape(B, Lk, num_heads, d_k).transpose(0, 2, 1, 3)
    scores = jnp.einsum('bhqe,bhke->bhqk', qp, kp) / math.sqrt(d_k)
    s = jnp.broadcast_to(scores[..., None], (B, num_heads, Lq, Lk, D))
    if mask is not None:
        m = mask[:, None, None, :, :]
        s = jnp.where(m == 0, -1e9, s)
    p = jax.nn.softmax(s, axis=-2)
    x = jnp.sum(p * value[:, None, None, :, :], axis=-2)       # (B, h, Lq, D)
    x = x.transpose(0, 2, 1, 3).reshape(B, Lq, num_heads * D)
    return x @ wo + bo


if __name__ == "__main__":
    # module hyper-params (small)
    B, Lq, Lk = 2, 8, 8
    input_dim = 4          # D (value feature channels)
    embed_time = 16        # E
    num_heads = 2
    nhidden = 32

    key0 = jax.random.PRNGKey(0)
    ks = jax.random.split(key0, 10)

    query = jax.random.normal(ks[0], (B, Lq, embed_time), dtype=jnp.float32)
    key_t = jax.random.normal(ks[1], (B, Lk, embed_time), dtype=jnp.float32)
    value = jax.random.normal(ks[2], (B, Lk, input_dim), dtype=jnp.float32)
    mask = (jax.random.uniform(ks[3], (B, Lk, input_dim)) > 0.3).astype(jnp.float32)
    mask = mask.at[0, :, 0].set(0.0)   # exercise the all-keys-masked fallback

    # deterministic parameter init (weights stored (in, out); biases (1, out))
    wq = jax.random.normal(ks[4], (embed_time, embed_time), dtype=jnp.float32) * 0.1
    bq = jax.random.normal(ks[5], (1, embed_time), dtype=jnp.float32) * 0.1
    wk = jax.random.normal(ks[6], (embed_time, embed_time), dtype=jnp.float32) * 0.1
    bk = jax.random.normal(ks[7], (1, embed_time), dtype=jnp.float32) * 0.1
    wo = jax.random.normal(ks[8], (input_dim * num_heads, nhidden), dtype=jnp.float32) * 0.1
    bo = jax.random.normal(ks[9], (1, nhidden), dtype=jnp.float32) * 0.1
    params = (wq, bq, wk, bk, wo, bo)

    # 1) masked, f32 MXU operands
    out = jax.block_until_ready(
        multi_time_attention(query, key_t, value, params, num_heads, mask=mask))
    ref = reference_forward(query, key_t, value, params, num_heads, mask=mask)
    assert out.shape == (B, Lq, nhidden), out.shape
    assert out.dtype == query.dtype, out.dtype
    assert jnp.allclose(out, ref, atol=1e-3, rtol=1e-3), float(jnp.max(jnp.abs(out - ref)))

    # 2) mask=None compiles the dedicated no-mask kernel (algebraic V@Wo fusion)
    out_nm = jax.block_until_ready(
        multi_time_attention(query, key_t, value, params, num_heads, mask=None))
    ref_nm = reference_forward(query, key_t, value, params, num_heads, mask=None)
    assert jnp.allclose(out_nm, ref_nm, atol=1e-3, rtol=1e-3), \
        float(jnp.max(jnp.abs(out_nm - ref_nm)))

    # 3) bf16 MXU-operand fast path (v6e/v7x); accumulation stays f32
    out_bf = jax.block_until_ready(
        multi_time_attention(query, key_t, value, params, num_heads, mask=mask,
                             use_bf16_matmul=True))
    assert jnp.allclose(out_bf, ref, atol=5e-2, rtol=5e-2), \
        float(jnp.max(jnp.abs(out_bf - ref)))

    print("KERNEL_OK")
</pallas_src>

<mosaic_0001>
module attributes {stable_mosaic.version = 11 : i64} {
  func.func @kernel(%arg0: i32, %arg1: i32, %arg2: memref<1x8x16xf32, #tpu.memory_space<vmem>>, %arg3: memref<1x2x8x8xf32, #tpu.memory_space<vmem>>, %arg4: memref<1x8x8xf32, #tpu.memory_space<vmem>>, %arg5: memref<1x1x4xf32, #tpu.memory_space<vmem>>, %arg6: memref<16x16xf32, #tpu.memory_space<vmem>>, %arg7: memref<1x16xf32, #tpu.memory_space<vmem>>, %arg8: memref<2x4x128xf32, #tpu.memory_space<vmem>>, %arg9: memref<1x128xf32, #tpu.memory_space<vmem>>, %arg10: memref<1x8x128xf32, #tpu.memory_space<vmem>>) attributes {dimension_semantics = [#tpu.dimension_semantics<parallel>, #tpu.dimension_semantics<parallel>], iteration_bounds = array<i64: 2, 1>, scalar_prefetch = 0 : i64, scratch_operands = 0 : i64, tpu.core_type = #tpu.core_type<tc>, window_params = [{transform_indices = @transform_0, window_bounds = array<i64: 1, 8, 16>}, {transform_indices = @transform_1, window_bounds = array<i64: 1, 2, 8, 8>}, {transform_indices = @transform_2, window_bounds = array<i64: 1, 8, 8>}, {transform_indices = @transform_3, window_bounds = array<i64: 1, 1, 4>}, {pipeline_mode = #tpu.pipeline_mode<synchronous>, transform_indices = @transform_4, window_bounds = array<i64: 16, 16>}, {pipeline_mode = #tpu.pipeline_mode<synchronous>, transform_indices = @transform_5, window_bounds = array<i64: 1, 16>}, {pipeline_mode = #tpu.pipeline_mode<synchronous>, transform_indices = @transform_6, window_bounds = array<i64: 2, 4, 128>}, {pipeline_mode = #tpu.pipeline_mode<synchronous>, transform_indices = @transform_7, window_bounds = array<i64: 1, 128>}, {transform_indices = @transform_8, window_bounds = array<i64: 1, 8, 128>}]} {
    %c0 = arith.constant 0 : index
    %c0_0 = arith.constant 0 : index
    %c0_1 = arith.constant 0 : index
    %0 = vector.load %arg2[%c0, %c0_0, %c0_1] : memref<1x8x16xf32, #tpu.memory_space<vmem>>, vector<1x8x16xf32>
    %1 = vector.shape_cast %0 : vector<1x8x16xf32> to vector<8x16xf32>
    %c0_2 = arith.constant 0 : index
    %c0_3 = arith.constant 0 : index
    %2 = vector.load %arg6[%c0_2, %c0_3] : memref<16x16xf32, #tpu.memory_space<vmem>>, vector<16x16xf32>
    %cst = arith.constant dense<0.000000e+00> : vector<8x16xf32>
    %3 = tpu.matmul %1, %2, %cst {dimension_numbers = #tpu.dot_dimension_numbers<[1], [0], [0], [1], [0, 0, 1, 1], [], []>} : vector<8x16xf32>, vector<16x16xf32>, vector<8x16xf32> -> vector<8x16xf32>
    %c0_4 = arith.constant 0 : index
    %c0_5 = arith.constant 0 : index
    %4 = vector.load %arg7[%c0_4, %c0_5] : memref<1x16xf32, #tpu.memory_space<vmem>>, vector<1x16xf32>
    %5 = vector.broadcast %4 : vector<1x16xf32> to vector<8x16xf32>
    %6 = arith.addf %3, %5 : vector<8x16xf32>
    %c0_6 = arith.constant 0 : index
    %c0_7 = arith.constant 0 : index
    %7 = vector.load %arg9[%c0_6, %c0_7] : memref<1x128xf32, #tpu.memory_space<vmem>>, vector<1x128xf32>
    %c0_8 = arith.constant 0 : index
    %c0_9 = arith.constant 0 : index
    %c0_10 = arith.constant 0 : index
    %8 = vector.load %arg8[%c0_8, %c0_9, %c0_10] : memref<2x4x128xf32, #tpu.memory_space<vmem>>, vector<1x4x128xf32>
    %9 = vector.shape_cast %8 : vector<1x4x128xf32> to vector<4x128xf32>
    %c1 = arith.constant 1 : index
    %c0_11 = arith.constant 0 : index
    %c0_12 = arith.constant 0 : index
    %10 = vector.load %arg8[%c1, %c0_11, %c0_12] : memref<2x4x128xf32, #tpu.memory_space<vmem>>, vector<1x4x128xf32>
    %11 = vector.shape_cast %10 : vector<1x4x128xf32> to vector<4x128xf32>
    %c0_13 = arith.constant 0 : index
    %c0_14 = arith.constant 0 : index
    %c0_15 = arith.constant 0 : index
    %12 = vector.load %arg4[%c0_13, %c0_14, %c0_15] : memref<1x8x8xf32, #tpu.memory_space<vmem>>, vector<1x8x8xf32>
    %13 = vector.shape_cast %12 : vector<1x8x8xf32> to vector<8x8xf32>
    %c0_16 = arith.constant 0 : index
    %c0_17 = arith.constant 0 : index
    %c0_18 = arith.constant 0 : index
    %14 = vector.load %arg5[%c0_16, %c0_17, %c0_18] : memref<1x1x4xf32, #tpu.memory_space<vmem>>, vector<1x1x4xf32>
    %15 = vector.shape_cast %14 : vector<1x1x4xf32> to vector<1x4xf32>
    %16 = vector.extract_strided_slice %6 {offsets = [0, 0], sizes = [8, 8], strides = [1, 1]} : vector<8x16xf32> to vector<8x8xf32>
    %c0_19 = arith.constant 0 : index
    %c0_20 = arith.constant 0 : index
    %c0_21 = arith.constant 0 : index
    %c0_22 = arith.constant 0 : index
    %17 = vector.load %arg3[%c0_19, %c0_20, %c0_21, %c0_22] : memref<1x2x8x8xf32, #tpu.memory_space<vmem>>, vector<1x1x8x8xf32>
    %18 = vector.shape_cast %17 : vector<1x1x8x8xf32> to vector<8x8xf32>
    %cst_23 = arith.constant dense<0.000000e+00> : vector<8x8xf32>
    %19 = tpu.matmul %16, %18, %cst_23 {dimension_numbers = #tpu.dot_dimension_numbers<[1], [0], [0], [1], [0, 0, 1, 1], [], []>} : vector<8x8xf32>, vector<8x8xf32>, vector<8x8xf32> -> vector<8x8xf32>
    %cst_24 = arith.constant 0.353553385 : f32
    %20 = vector.broadcast %cst_24 : f32 to vector<8x8xf32>
    %21 = arith.mulf %19, %20 : vector<8x8xf32>
    %cst_25 = arith.constant dense<0xFF800000> : vector<8xf32>
    %22 = vector.multi_reduction <maximumf>, %21, %cst_25 [1] : vector<8x8xf32> to vector<8xf32>
    %23 = vector.shape_cast %22 : vector<8xf32> to vector<8x1xf32>
    %24 = vector.broadcast %23 : vector<8x1xf32> to vector<8x8xf32>
    %25 = arith.subf %21, %24 : vector<8x8xf32>
    %26 = math.exp %25 : vector<8x8xf32>
    %cst_26 = arith.constant dense<0.000000e+00> : vector<8x8xf32>
    %27 = tpu.matmul %26, %13, %cst_26 {dimension_numbers = #tpu.dot_dimension_numbers<[1], [0], [0], [1], [0, 0, 1, 1], [], []>} : vector<8x8xf32>, vector<8x8xf32>, vector<8x8xf32> -> vector<8x8xf32>
    %28 = vector.extract_strided_slice %27 {offsets = [0, 0], sizes = [8, 4], strides = [1, 1]} : vector<8x8xf32> to vector<8x4xf32>
    %29 = vector.extract_strided_slice %27 {offsets = [0, 4], sizes = [8, 4], strides = [1, 1]} : vector<8x8xf32> to vector<8x4xf32>
    %cst_27 = arith.constant 0.000000e+00 : f32
    %30 = vector.broadcast %cst_27 : f32 to vector<8x4xf32>
    %31 = arith.cmpf ogt, %29, %30 : vector<8x4xf32>
    %cst_28 = arith.constant 1.000000e+00 : f32
    %32 = vector.broadcast %cst_28 : f32 to vector<8x4xf32>
    %33 = arith.select %31, %29, %32 : vector<8x4xi1>, vector<8x4xf32>
    %34 = tpu.reciprocal %33 {approx = true} : vector<8x4xf32> -> vector<8x4xf32>
    %35 = arith.mulf %33, %34 : vector<8x4xf32>
    %cst_29 = arith.constant 2.000000e+00 : f32
    %36 = vector.broadcast %cst_29 : f32 to vector<8x4xf32>
    %37 = arith.subf %36, %35 : vector<8x4xf32>
    %38 = arith.mulf %34, %37 : vector<8x4xf32>
    %39 = arith.mulf %28, %38 : vector<8x4xf32>
    %40 = vector.shape_cast %15 : vector<1x4xf32> to vector<1x4xf32>
    %41 = vector.broadcast %40 : vector<1x4xf32> to vector<8x4xf32>
    %42 = arith.select %31, %39, %41 : vector<8x4xi1>, vector<8x4xf32>
    %cst_30 = arith.constant dense<0.000000e+00> : vector<8x128xf32>
    %43 = tpu.matmul %42, %9, %cst_30 {dimension_numbers = #tpu.dot_dimension_numbers<[1], [0], [0], [1], [0, 0, 1, 1], [], []>} : vector<8x4xf32>, vector<4x128xf32>, vector<8x128xf32> -> vector<8x128xf32>
    %44 = vector.extract_strided_slice %6 {offsets = [0, 8], sizes = [8, 8], strides = [1, 1]} : vector<8x16xf32> to vector<8x8xf32>
    %c0_31 = arith.constant 0 : index
    %c1_32 = arith.constant 1 : index
    %c0_33 = arith.constant 0 : index
    %c0_34 = arith.constant 0 : index
    %45 = vector.load %arg3[%c0_31, %c1_32, %c0_33, %c0_34] : memref<1x2x8x8xf32, #tpu.memory_space<vmem>>, vector<1x1x8x8xf32>
    %46 = vector.shape_cast %45 : vector<1x1x8x8xf32> to vector<8x8xf32>
    %cst_35 = arith.constant dense<0.000000e+00> : vector<8x8xf32>
    %47 = tpu.matmul %44, %46, %cst_35 {dimension_numbers = #tpu.dot_dimension_numbers<[1], [0], [0], [1], [0, 0, 1, 1], [], []>} : vector<8x8xf32>, vector<8x8xf32>, vector<8x8xf32> -> vector<8x8xf32>
    %cst_36 = arith.constant 0.353553385 : f32
    %48 = vector.broadcast %cst_36 : f32 to vector<8x8xf32>
    %49 = arith.mulf %47, %48 : vector<8x8xf32>
    %cst_37 = arith.constant dense<0xFF800000> : vector<8xf32>
    %50 = vector.multi_reduction <maximumf>, %49, %cst_37 [1] : vector<8x8xf32> to vector<8xf32>
    %51 = vector.shape_cast %50 : vector<8xf32> to vector<8x1xf32>
    %52 = vector.broadcast %51 : vector<8x1xf32> to vector<8x8xf32>
    %53 = arith.subf %49, %52 : vector<8x8xf32>
    %54 = math.exp %53 : vector<8x8xf32>
    %cst_38 = arith.constant dense<0.000000e+00> : vector<8x8xf32>
    %55 = tpu.matmul %54, %13, %cst_38 {dimension_numbers = #tpu.dot_dimension_numbers<[1], [0], [0], [1], [0, 0, 1, 1], [], []>} : vector<8x8xf32>, vector<8x8xf32>, vector<8x8xf32> -> vector<8x8xf32>
    %56 = vector.extract_strided_slice %55 {offsets = [0, 0], sizes = [8, 4], strides = [1, 1]} : vector<8x8xf32> to vector<8x4xf32>
    %57 = vector.extract_strided_slice %55 {offsets = [0, 4], sizes = [8, 4], strides = [1, 1]} : vector<8x8xf32> to vector<8x4xf32>
    %cst_39 = arith.constant 0.000000e+00 : f32
    %58 = vector.broadcast %cst_39 : f32 to vector<8x4xf32>
    %59 = arith.cmpf ogt, %57, %58 : vector<8x4xf32>
    %cst_40 = arith.constant 1.000000e+00 : f32
    %60 = vector.broadcast %cst_40 : f32 to vector<8x4xf32>
    %61 = arith.select %59, %57, %60 : vector<8x4xi1>, vector<8x4xf32>
    %62 = tpu.reciprocal %61 {approx = true} : vector<8x4xf32> -> vector<8x4xf32>
    %63 = arith.mulf %61, %62 : vector<8x4xf32>
    %cst_41 = arith.constant 2.000000e+00 : f32
    %64 = vector.broadcast %cst_41 : f32 to vector<8x4xf32>
    %65 = arith.subf %64, %63 : vector<8x4xf32>
    %66 = arith.mulf %62, %65 : vector<8x4xf32>
    %67 = arith.mulf %56, %66 : vector<8x4xf32>
    %68 = vector.shape_cast %15 : vector<1x4xf32> to vector<1x4xf32>
    %69 = vector.broadcast %68 : vector<1x4xf32> to vector<8x4xf32>
    %70 = arith.select %59, %67, %69 : vector<8x4xi1>, vector<8x4xf32>
    %cst_42 = arith.constant dense<0.000000e+00> : vector<8x128xf32>
    %71 = tpu.matmul %70, %11, %cst_42 {dimension_numbers = #tpu.dot_dimension_numbers<[1], [0], [0], [1], [0, 0, 1, 1], [], []>} : vector<8x4xf32>, vector<4x128xf32>, vector<8x128xf32> -> vector<8x128xf32>
    %72 = arith.addf %43, %71 : vector<8x128xf32>
    %73 = vector.broadcast %7 : vector<1x128xf32> to vector<8x128xf32>
    %74 = arith.addf %72, %73 : vector<8x128xf32>
    %c0_43 = arith.constant 0 : index
    %c0_44 = arith.constant 0 : index
    %c0_45 = arith.constant 0 : index
    %75 = vector.load %arg10[%c0_43, %c0_44, %c0_45] : memref<1x8x128xf32, #tpu.memory_space<vmem>>, vector<1x8x128xf32>
    %76 = vector.shape_cast %75 : vector<1x8x128xf32> to vector<8x128xf32>
    %77 = vector.shape_cast %74 : vector<8x128xf32> to vector<1x8x128xf32>
    tpu.vector_store %arg10[%c0_43, %c0_44, %c0_45], %77 {strides = array<i32>} : memref<1x8x128xf32, #tpu.memory_space<vmem>>, vector<1x8x128xf32>,
    return
  }
  func.func @transform_0(%arg0: i32, %arg1: i32) -> (i32, i32, i32) {
    %c0_i32 = arith.constant 0 : i32
    %c0_i32_0 = arith.constant 0 : i32
    return %arg0, %arg1, %c0_i32 : i32, i32, i32
  }
  func.func @transform_1(%arg0: i32, %arg1: i32) -> (i32, i32, i32, i32) {
    %c0_i32 = arith.constant 0 : i32
    %c0_i32_0 = arith.constant 0 : i32
    %c0_i32_1 = arith.constant 0 : i32
    %c0_i32_2 = arith.constant 0 : i32
    return %arg0, %c0_i32, %c0_i32_0, %c0_i32_1 : i32, i32, i32, i32
  }
  func.func @transform_2(%arg0: i32, %arg1: i32) -> (i32, i32, i32) {
    %c0_i32 = arith.constant 0 : i32
    %c0_i32_0 = arith.constant 0 : i32
    %c0_i32_1 = arith.constant 0 : i32
    return %arg0, %c0_i32, %c0_i32_0 : i32, i32, i32
  }
  func.func @transform_3(%arg0: i32, %arg1: i32) -> (i32, i32, i32) {
    %c0_i32 = arith.constant 0 : i32
    %c0_i32_0 = arith.constant 0 : i32
    %c0_i32_1 = arith.constant 0 : i32
    return %arg0, %c0_i32, %c0_i32_0 : i32, i32, i32
  }
  func.func @transform_4(%arg0: i32, %arg1: i32) -> (i32, i32) {
    %c0_i32 = arith.constant 0 : i32
    %c0_i32_0 = arith.constant 0 : i32
    %c0_i32_1 = arith.constant 0 : i32
    return %c0_i32, %c0_i32_0 : i32, i32
  }
  func.func @transform_5(%arg0: i32, %arg1: i32) -> (i32, i32) {
    %c0_i32 = arith.constant 0 : i32
    %c0_i32_0 = arith.constant 0 : i32
    %c0_i32_1 = arith.constant 0 : i32
    return %c0_i32, %c0_i32_0 : i32, i32
  }
  func.func @transform_6(%arg0: i32, %arg1: i32) -> (i32, i32, i32) {
    %c0_i32 = arith.constant 0 : i32
    %c0_i32_0 = arith.constant 0 : i32
    %c0_i32_1 = arith.constant 0 : i32
    %c0_i32_2 = arith.constant 0 : i32
    return %c0_i32, %c0_i32_0, %c0_i32_1 : i32, i32, i32
  }
  func.func @transform_7(%arg0: i32, %arg1: i32) -> (i32, i32) {
    %c0_i32 = arith.constant 0 : i32
    %c0_i32_0 = arith.constant 0 : i32
    %c0_i32_1 = arith.constant 0 : i32
    return %c0_i32, %c0_i32_0 : i32, i32
  }
  func.func @transform_8(%arg0: i32, %arg1: i32) -> (i32, i32, i32) {
    %c0_i32 = arith.constant 0 : i32
    %c0_i32_0 = arith.constant 0 : i32
    return %arg0, %arg1, %c0_i32 : i32, i32, i32
  }
}

</mosaic_0001>

<bundles_post_ra>
// kernel: tpu_custom_call.1
= control target key start
LH: loop header
LB: loop body
LE: loop exit
PB: predicated region body
PF: predicated region fallthrough
CT: control target
= control target key end

     0   :  { %s1534_s0 = inlined_call_operand.hbm [shape: f32[2,8,16], index: 0, kind: input, shape index: {}]   ;;  %s1535_s1 = inlined_call_operand.hbm [shape: f32[2,2,8,8], index: 1, kind: input, shape index: {}]   ;;  %s1536_s2 = inlined_call_operand.hbm [shape: f32[2,8,8], index: 2, kind: input, shape index: {}]   ;;  %s1537_s3 = inlined_call_operand.vmem [shape: f32[2,1,4], index: 3, kind: input, shape index: {}]   ;;  %s1538_s4 = inlined_call_operand.hbm [shape: f32[16,16], index: 4, kind: input, shape index: {}]   ;;  %s1539_s5 = inlined_call_operand.vmem [shape: f32[1,16], index: 5, kind: input, shape index: {}]   ;;  %s1540_s6 = inlined_call_operand.hbm [shape: f32[2,4,128], index: 6, kind: input, shape index: {}]   ;;  %s1541_s7 = inlined_call_operand.vmem [shape: f32[1,128], index: 7, kind: input, shape index: {}]   ;;  %s1542_s8 = inlined_call_operand.hbm [shape: f32[2,8,128], index: 8, kind: output, shape index: {}]  }
   0x1   :  { %1553 = sst [smem:[#allocation23_spill]] %s1535_s1 }
   0x2   :  { %1554 = sst [smem:[#allocation24_spill]] %s1538_s4 }
   0x3   :  { %1555 = sst [smem:[#allocation25_spill]] %s1541_s7 }
   0x4   :  { %13 = vsyncpa [#allocation3], 0 }
   0x5   :  { %15 = vsyncpa [#allocation3 + $0x1], 0 }
   0x6   :  { %16 = vsyncpa [#allocation6], 0 }
   0x7   :  { %18 = vsyncpa [#allocation6 + $0x1], 0 }
   0x8   :  { %19 = vsyncpa [#allocation9], 0 }
   0x9   :  { %20 = vsyncpa [#allocation4], 0 }
   0xa   :  { %22 = vsyncpa [#allocation4 + $0x1], 0  ;;  %s1323_s27 = smov 0   ;;  %s1325_s28 = smov 0  }
   0xb   :  { %s1327_s29 = smov 0   ;;  %s1329_s30 = smov 0  }
   0xc   :  { %s1331_s9 = smov 0   ;;  %s1333_s10 = smov 0  }
   0xd LB: > { %1556 = sst [smem:[#allocation16_spill]] %s1247_s27  ;;  %s1354_s11 = sadd.s32 4294967295, %s1267_s10   ;;  %s1267_s10 = sphi %s1333_s10, %s28_s10   ;;  %s1263_s9 = sphi %s1331_s9, %s1586_s9   ;;  %s1259_s30 = sphi %s1329_s30, %s1585_s30   ;;  %s1255_s29 = sphi %s1327_s29, %s1584_s29   ;;  %s1251_s28 = sphi %s1325_s28, %s1583_s28   ;;  %s1247_s27 = sphi %s1323_s27, %s1582_s27  }
   0xe   : > { %1557 = sst [smem:[#allocation17_spill]] %s1255_s29  ;;  %s882_s12 = sadd.s32 4294967294, %s1267_s10  }
   0xf   : > { %1558 = sst [smem:[#allocation18_spill]] %s1267_s10  ;;  %p62_p0 = scmp.ne.s32.totalorder %s1251_s28, %s1247_s27 }
  0x10   : > { %p63_p1 = scmp.eq.s32.totalorder %s1354_s11, 0  ;;  %p250_p2 = scmp.eq.s32.totalorder %s1354_s11, 1 }
  0x11   : > { %p256_p3 = scmp.eq.s32.totalorder %s882_s12, 1  ;;  %p883_p5 = scmp.ge.s32.totalorder %s1267_s10, 1 }
  0x12   : > { %p1363_p4 = por %p63_p1, %p62_p0  ;;  %p263_p7 = scmp.lt.s32.totalorder %s1267_s10, 3 }
  0x13   : > { %p1368_p6 = por %p256_p3, %p62_p0  ;;  %s1562_s4 = sld [smem:[#allocation24_spill]] }
  0x14   : > { %p1376_p8 = pnand %p883_p5, %p263_p7  ;;  %s1269_s19 = smov [#allocation8]  }
  0x15   : > { %s1560_s14 = scalar_select %p1368_p6, 1, 0 }
  0x16   : > { %p932_p9 = pneg %p1376_p8  ;;  %s276_s20 = sshll.u32 %s1269_s19, 4  ;;  %s277_s20 = int_to_ptr.vmem [resolvable:$true] %s276_s20 }
  0x17   : > { %1561 = sst [smem:[#allocation19_spill]] %s1560_s14  ;;  %s1543_s22 = smov 128  }
  0x18   : > { %p1384_p10 = pnand %p932_p9, %p63_p1  ;;  %s1544_s23 = smov 8  }
  0x19   : > { %s274_s17 = sshll.u32 %s1562_s4, 4  ;;  %s40_s24 = sadd.s32 1, %s1263_s9  ;;  %s275_s17 = int_to_ptr.hbm [resolvable:$true] %s274_s17 }
  0x1a   : > { %935 = dma.hbm_to_vmem [thread:$0]  (!%p1384_p10), %s275_s17, 256, %s277_s20, [#allocation9], %s1543_s22, %s1543_s22, %s1544_s23  }
  0x1b   : > { %p42_p12 = scmp.ge.s32.totalorder %s40_s24, 2  ;;  %s49_s25 = sadd.s32 1, %s1255_s29 }
  0x1c   : > { %p56_p13 = scmp.ne.s32.totalorder %s1255_s29, %s1251_s28  ;;  %p57_p0 = scmp.eq.s32.totalorder %s1267_s10, 0 }
  0x1d   : > { %s1588_s24 = smov (%p42_p12, %s40_s24), 0  ;;  %p955_p7 = scmp.lt.s32.totalorder %s1267_s10, 2 }
  0x1e   : > { %1565 = sst [smem:[#allocation20_spill]] %s1588_s24  ;;  %p58_p3 = por %p57_p0, %p56_p13 }
  0x1f   : > { %p1403_p5 = por %p250_p2, %p56_p13  ;;  %s44_s12 = ssub.s32 %s1263_s9, %s1588_s24 }
  0x20   : > { %p47_p9 = scmp.eq.s32.totalorder %s44_s12, 0  ;;  %s1411_s15 = sand.u32 1, %s1255_s29  }
  0x21   : > { %s1566_s26 = scalar_select %p1403_p5, 1, 0 }
  0x22   : > { %p1413_p11 = pnand %p955_p7, %p58_p3  ;;  %s330_s17 = sand.u32 1, %s1267_s10  }
  0x23   : > { %1567 = sst [smem:[#allocation21_spill]] %s1566_s26  ;;  %s889_s20 = sshll.u32 %s1411_s15, 4 }
  0x24   : > { %s1419_s19 = scalar_select %p47_p9, %s1255_s29, %s49_s25  }
  0x25   : > { %s915_s22 = sshll.u32 %s1263_s9, 4  ;;  %s1570_s1 = sld [smem:[#allocation23_spill]] }
  0x26   : > { %1569 = sst [smem:[#allocation22_spill]] %s1419_s19  ;;  %s334_s14 = scalar_lea.vmem [#allocation5], %s889_s20 }
  0x27   : > { %s342_s27 = sshll.u32 %s334_s14, 4  ;;  %s331_s26 = scalar_lea.sflag [#allocation6], %s330_s17  ;;  %s343_s27 = int_to_ptr.vmem [resolvable:$true] %s342_s27 }
  0x28   : > { %s1571_s7 = smov 8   ;;  %s1572_s10 = smov 128  }
  0x29   : > { %s291_s29 = sshll.u32 %s1540_s6, 4  ;;  %s1272_s4 = smov [#allocation10]   ;;  %s292_s29 = int_to_ptr.hbm [resolvable:$true] %s291_s29 }
  0x2a   : > { %s1273_s23 = smov 64   ;;  %s1274_s14 = smov 4  }
  0x2b   : > { %s339_s24 = scalar_lea.hbm %s1570_s1, %s915_s22  ;;  %s293_s22 = sshll.u32 %s1272_s4, 4  ;;  %s294_s22 = int_to_ptr.vmem [resolvable:$true] %s293_s22 }
  0x2c   : > { %s340_s12 = sshll.u32 %s339_s24, 4  ;;  %s887_s24 = sshll.u32 %s1411_s15, 3  ;;  %s341_s12 = int_to_ptr.hbm [resolvable:$true] %s340_s12 }
  0x2d   : > { %945 = dma.hbm_to_vmem [thread:$0]  (!%p1413_p11), %s341_s12, 256, %s343_s27, %s331_s26, %s1572_s10, %s1572_s10, %s1571_s7  }
  0x2e   : > { %938 = dma.hbm_to_vmem [thread:$0]  (!%p1384_p10), %s292_s29, 128, %s294_s22, [#allocation9], %s1273_s23, %s1273_s23, %s1274_s14  }
  0x2f   : > { %s888_s17 = sshll.u32 %s1263_s9, 3  ;;  %s314_s10 = scalar_lea.vmem [#allocation2], %s887_s24 }
  0x30   : > { %s319_s7 = scalar_lea.hbm %s1534_s0, %s888_s17  ;;  %s323_s19 = sshll.u32 %s314_s10, 4  ;;  %s324_s19 = int_to_ptr.vmem [resolvable:$true] %s323_s19 }
  0x31   : > { %s321_s27 = sshll.u32 %s319_s7, 4  ;;  %s311_s12 = scalar_lea.sflag [#allocation3], %s1411_s15  ;;  %s322_s27 = int_to_ptr.hbm [resolvable:$true] %s321_s27 }
  0x32   : > { %942 = dma.hbm_to_vmem [thread:$0]  (!%p1413_p11), %s322_s27, 128, %s324_s19, %s311_s12  }
  0x33   : > { %s360_s21 = scalar_lea.hbm %s1536_s2, %s888_s17  ;;  %s356_s22 = scalar_lea.vmem [#allocation7], %s887_s24 }
  0x34   : > { %s362_s29 = sshll.u32 %s360_s21, 4  ;;  %s364_s23 = sshll.u32 %s356_s22, 4  ;;  %s363_s29 = int_to_ptr.hbm [resolvable:$true] %s362_s29  ;;  %s365_s23 = int_to_ptr.vmem [resolvable:$true] %s364_s23 }
  0x35   : > { %948 = dma.hbm_to_vmem [thread:$0]  (!%p1413_p11), %s363_s29, 128, %s365_s23, %s331_s26  }
  0x36   : > { %379 = sbr.rel (%p1376_p8) target bundleno = 1130 (0x46a), region = 52  ;;  %s1452_s1 = sand.u32 (!%p1376_p8), 1, %s1251_s28  }
  0x37   : > { %s1455_s15 = sshll.u32 (!%p1376_p8), %s1452_s1, 3  ;;  %s382_s14 = scalar_lea.sflag (!%p1376_p8), [#allocation3], %s1452_s1 }
  0x38   : > { %s385_s17 = scalar_lea.vmem (!%p1376_p8), [#allocation2], %s1455_s15 }
  0x3b   : > { %1230 = dma.done.wait (%p1363_p4), %s382_s14, 128  }
  0x3c   : > { %1232 = vsyncadd (%p1363_p4), %s382_s14, 4294967168  ;;  %s391_s18 = sand.u32 1, %s1354_s11   ;;  %s896_s26 = sshll.u32 %s1452_s1, 4 }
  0x3d   : > { %s392_s16 = scalar_lea.sflag [#allocation6], %s391_s18  ;;  %s395_s24 = scalar_lea.vmem [#allocation5], %s896_s26 }
  0x3e   : > { %1234 = dma.done.wait (%p1363_p4), %s392_s16, 384  }
  0x3f   : > { %1236 = vsyncadd (%p1363_p4), %s392_s16, 4294966912  ;;  %s405_s20 = scalar_lea.vmem [#allocation7], %s1455_s15 }
  0x40   : > { %1238 = dma.done.wait (%p63_p1), [#allocation9], 384  }
  0x41   : > { %1240 = vsyncadd (%p63_p1), [#allocation9], 4294966912  ;;  %v467_v0 = vld [vmem:[#allocation8 + $0x8] sm:$0xff]  ;;  %v466_v1 = vld [vmem:[#allocation8] sm:$0xff]  ;;  %vm472_vm0 = vcmask 130048   ;;  %vm503_vm1 = vcmask 64512  }
  0x42   : > { %490 = vmatpush.msra.mxu0 %v467_v0  ;;  %v465_v2 = vld [vmem:[%s385_s17] sm:$0xff]  ;;  %v502_v3 = vld [vmem:[%s395_s24] sm:$0xff]  ;;  %s1275_s11 = smov 120   ;;  %p462_p1 = scmp.lt.s32.totalorder %s1259_s30, 1  ;;  %vm656_vm4 = vcmask 1043456   ;;  %vm653_vm5 = vcmask 31744  }
  0x43   : > { %522 = vmatpush.msra.mxu1 %v502_v3  ;;  %v904_v4 = vld [vmem:[%s395_s24 + $0x8] sm:$0xff]  ;;  %v1016_v5 = vld [vmem:[%s1539_s5] ss:$0 sm:$0xff]  ;;  %v500_v12 = vld [vmem:[%s405_s20] sm:$0xff]  ;;  %s1276_s25 = smov 124   ;;  %s1277_s4 = smov 4  }
  0x44   : > { %491 = vmatpush.msra.mxu0 %v466_v1  ;;  %599 = vmatpush.msra.mxu3 %v904_v4  ;;  %s463_s27 = scalar_select %p462_p1, %s1259_s30, 1  ;;  %v497_v44 = vld [vmem:[#allocation10] sm:$0xf]  ;;  %v499_v47 = vld [vmem:[#allocation10 + $0x4] sm:$0xf] }
  0x45   : > { %901 = vmatmul.msk.f32.vlgmr.msra.gmra.mxu0 %vm472_vm0, %v465_v2  ;;  %552 = vmatpush.msra.mxu2 %v500_v12  ;;  %s912_s21 = sshll.u32 %s1259_s30, 3  ;;  %s1573_s18 = sld [smem:[#allocation25_spill]] }
  0x46   : > { %629 = vmatpush.msrb.mxu1 %v500_v12  ;;  %s464_s12 = scalar_lea.vmem %s1537_s3, %s463_s27  ;;  %909 = vmatpush.msk.msrb.mxu3 %vm656_vm4, %v497_v44  ;;  %s725_s23 = scalar_lea.hbm %s1542_s8, %s912_s21 }
  0x47   : > { %v1017_v36 = vld [vmem:[%s464_s12] ss:$0 sm:$0xff]  ;;  %907 = vmatpush.msk.msrb.mxu2 %vm656_vm4, %v499_v47  ;;  %s461_s16 = scalar_lea.vmem [#allocation11], %s1455_s15  ;;  %s729_s20 = sshll.u32 %s725_s23, 4  ;;  %s730_s20 = int_to_ptr.hbm [resolvable:$true] %s729_s20 }
  0x48   : > { %s727_s24 = sshll.u32 %s461_s16, 4  ;;  %s714_s30 = scalar_lea.sflag [#allocation4], %s1452_s1  ;;  %s728_s24 = int_to_ptr.vmem [resolvable:$true] %s727_s24 }
  0x49   : > { %s1191_s13 = sshra.s32 %s730_s20, 4  ;;  %s1197_s10 = scalar_lea.hbm %s1542_s8, 16  ;;  %s1192_s13 = int_to_ptr.hbm [resolvable:$true] %s1191_s13 }
  0x4a   : > { %s1193_s7 = scalar_lea.hbm %s1192_s13, 8  ;;  %p1198_p10 = scmp.lt.s32.totalorder %s1192_s13, %s1542_s8 }
  0x4b   : > { %v1018_v50 = vld [vmem:[%s1573_s18] ss:$0 sm:$0xff]  ;;  %p1194_p2 = scmp.ne.s32.totalorder %s1192_s13, %s1193_s7  ;;  %p1199_p11 = scmp.lt.s32.totalorder %s1197_s10, %s1193_s7 }
  0x4d   : > { %p1195_p4 = pnand %p1194_p2, %p1403_p5  ;;  %p1200_p12 = por %p1199_p11, %p1198_p10 }
  0x4f   : > { %p1196_p8 = pneg %p1195_p4 }
  0x51   : > { %p1201_p13 = pnand %p1200_p12, %p1196_p8 }
  0xc2   : > { %v493_v6 = vpop.f32.mrf.mxu0 }
  0xc3   : > { %v494_v7 = vadd.f32 %v1016_v5, %v493_v6 }
  0xc5   : > { %580 = vrot.lane.b32.xlu0 %v494_v7, %s1275_s11  ;;  %902 = vmatmul.msk.f32.vlgmr.msra.gmra.mxu1 %vm503_vm1, %v494_v7 }
 0x137   : > { %v581_v8 = vpop.permute.xlu0 %580 }
 0x138   : > { %905 = vmatmul.msk.f32.vlgmr.msra.gmra.mxu3 %vm503_vm1, %v581_v8 }
 0x142   : > { %v524_v9 = vpop.f32.mrf.mxu1 }
 0x143   : > { %v527_v10 = vmul.f32 0.35355338, %v524_v9 }
 0x145   : > { %v528_v11 = vsel %vm503_vm1, %v527_v10, -inf }
 0x146   : > { %529 = vmax.xlane.f32.xlu0 %v528_v11 }
 0x1b9   : > { %v530_v13 = vpop.xlane.xlu0 %529 }
 0x1ba   : > { %v531_v14 = vsub.f32 %v527_v10, %v530_v13 }
 0x1bb   : > { %v601_v15 = vpop.f32.mrf.mxu3 }
 0x1bc   : > { %v532_v16 = vmul.f32 1.442695, %v531_v14  ;;  %v604_v17 = vmul.f32 0.35355338, %v601_v15 }
 0x1be   : > { %1019 = vpow2.f32 %v532_v16  ;;  %v605_v18 = vsel %vm503_vm1, %v604_v17, -inf }
 0x1bf   : > { %606 = vmax.xlane.f32.xlu1 %v605_v18 }
 0x1c4   : > { %v1020_v19 = vpop.eup %1019 }
 0x1c5   : > { %903 = vmatmul.msk.f32.vlgmr.msra.gmra.mxu2 %vm503_vm1, %v1020_v19 }
 0x232   : > { %v607_v20 = vpop.xlane.xlu1 %606 }
 0x233   : > { %v608_v21 = vsub.f32 %v604_v17, %v607_v20 }
 0x235   : > { %v609_v22 = vmul.f32 1.442695, %v608_v21 }
 0x237   : > { %1021 = vpow2.f32 %v609_v22 }
 0x23d   : > { %v1022_v23 = vpop.eup %1021 }
 0x23e   : > { %906 = vmatmul.msk.f32.vlgmr.msrb.gmra.mxu1 %vm503_vm1, %v1022_v23 }
 0x248   : > { %v554_v24 = vpop.f32.mrf.mxu2 }
 0x249   : > { %vm557_vm2 = vcmp.gt.f32.partialorder %v554_v24, 0.0 }
 0x24a   : > { %v558_v25 = vsel %vm557_vm2, %v554_v24, 1.0 }
 0x24b   : > { %1023 = vrcp.f32 %v558_v25 }
 0x251   : > { %v1024_v26 = vpop.eup %1023 }
 0x252   : > { %v560_v27 = vmul.f32 %v1024_v26, %v558_v25 }
 0x254   : > { %v561_v28 = vsub.f32 2.0, %v560_v27 }
 0x256   : > { %v562_v29 = vmul.f32 %v1024_v26, %v561_v28 }
 0x258   : > { %564 = vrot.lane.b32.xlu1 %v562_v29, %s1276_s25 }
 0x2bb   : > { %v631_v30 = vpop.f32.mrf.mxu1 }
 0x2bc   : > { %vm634_vm3 = vcmp.gt.f32.partialorder %v631_v30, 0.0 }
 0x2bd   : > { %v635_v31 = vsel %vm634_vm3, %v631_v30, 1.0 }
 0x2be   : > { %1025 = vrcp.f32 %v635_v31 }
 0x2c4   : > { %v1026_v32 = vpop.eup %1025 }
 0x2c5   : > { %v637_v33 = vmul.f32 %v1026_v32, %v635_v31 }
 0x2c7   : > { %v638_v34 = vsub.f32 2.0, %v637_v33 }
 0x2c9   : > { %v639_v35 = vmul.f32 %v1026_v32, %v638_v34 }
 0x2ca   : > { %v565_v37 = vpop.permute.xlu1 %564 }
 0x2cb   : > { %641 = vrot.lane.b32.xlu2 %v639_v35, %s1276_s25  ;;  %v567_v38 = vmul.f32 %v565_v37, %v554_v24 }
 0x2d3   : > { %574 = vrot.lane.b32.xlu2 %v1017_v36, %s1277_s4 }
 0x2db   : > { %571 = vrot.lane.b32.xlu2 %v567_v38, %s1277_s4 }
 0x325   : > { %v642_v39 = vpop.permute.xlu2 %641 }
 0x326   : > { %v644_v40 = vmul.f32 %v642_v39, %v631_v30 }
 0x328   : > { %646 = vrot.lane.b32.xlu2 %v644_v40, %s1277_s4 }
 0x32d   : > { %v575_v41 = vpop.permute.xlu2 %574 }
 0x335   : > { %v572_v42 = vpop.permute.xlu2 %571 }
 0x336   : > { %v577_v43 = vsel %vm557_vm2, %v572_v42, %v575_v41 }
 0x337   : > { %681 = vrot.lane.b32.xlu1 %v577_v43, %s1276_s25 }
 0x382   : > { %v647_v45 = vpop.permute.xlu2 %646 }
 0x383   : > { %v649_v46 = vsel %vm634_vm3, %v647_v45, %v575_v41 }
 0x384   : > { %651 = vrot.lane.b32.xlu2 %v649_v46, %s1276_s25 }
 0x3a9   : > { %v682_v48 = vpop.permute.xlu1 %681 }
 0x3aa   : > { %910 = vmatmul.msk.f32.vlgmr.msrb.gmra.mxu3 %vm653_vm5, %v682_v48 }
 0x3de   : > { %v652_v49 = vpop.permute.xlu2 %651 }
 0x3df   : > { %908 = vmatmul.msk.f32.vlgmr.msrb.gmra.mxu2 %vm653_vm5, %v652_v49 }
 0x42d   : > { %v705_v51 = vpop.f32.mrf.mxu3 }
 0x462   : > { %v677_v52 = vpop.f32.mrf.mxu2 }
 0x463   : > { %v706_v53 = vadd.f32 %v705_v51, %v677_v52 }
 0x465   : > { %v711_v54 = vadd.f32 %v1018_v50, %v706_v53 }
 0x467   : > { %712 = vst [vmem:[%s461_s16] sm:$0xff] %v711_v54 }
 0x468   : > { %1204 = shalt.err (!%p1201_p13)
}
 0x469   : > { %930 = dma.vmem_to_hbm [thread:$0]  (%p1403_p5), %s728_s24, 128, %s730_s20, %s714_s30  }
 0x46a PF: > { %s1575_s1 = sld [smem:[#allocation16_spill]] }
 0x46b   : > { %s1577_s25 = sld [smem:[#allocation18_spill]] }
 0x470   : > { %s741_s4 = sand.u32 1, %s1575_s1  }
 0x471   : > { %p1578_p0 = scmp.ge.s32.totalorder %s1577_s25, 2  ;;  %s742_s21 = scalar_lea.sflag [#allocation4], %s741_s4 }
 0x473   : > { %p950_p3 = pnand %p1578_p0, %p1368_p6 }
 0x475   : > { %p951_p7 = pneg %p950_p3 }
 0x477   : > { %1242 = dma.done.wait (%p951_p7), %s742_s21, 128  }
 0x478   : > { %1244 = vsyncadd (%p951_p7), %s742_s21, 4294967168  ;;  %s28_s10 = sadd.s32 1, %s1577_s25   ;;  %s1579_s29 = sld [smem:[#allocation17_spill]] }
 0x479   : > { %p25_p9 = scmp.ge.s32.totalorder %s28_s10, 4   ;;  %s1580_s22 = sld [smem:[#allocation22_spill]] }
 0x47a   : > { %s1581_s23 = sld [smem:[#allocation20_spill]]  ;;  %s1582_s27 = smov %s1251_s28 }
 0x47b   : > { %s1585_s30 = smov %s1263_s9 }
 0x47c   :  { %27 = sbr.rel (!%p25_p9) target bundleno = 13 (0xd), region = 134 }
 0x47e   : > { %s1583_s28 = smov %s1579_s29 }
 0x47f   : > { %s1584_s29 = smov %s1580_s22 }
 0x480   : > { %s1586_s9 = smov %s1581_s23 }
 0x481   :  { %748 = vsyncpa [#allocation3], 1 }
 0x482   :  { %750 = vsyncpa [#allocation3 + $0x1], 1 }
 0x483   :  { %751 = vsyncpa [#allocation6], 1 }
 0x484   :  { %753 = vsyncpa [#allocation6 + $0x1], 1 }
 0x485   :  { %754 = vsyncpa [#allocation9], 1 }
 0x486   :  { %755 = vsyncpa [#allocation4], 1 }
 0x487   :  { %757 = vsyncpa [#allocation4 + $0x1], 1 }

</bundles_post_ra>
